<compile_context>
chip_gen: v6e
topology: v6e:2x2x1
jax: 0.10.0
libtpu: 0.0.40
codegen_flags: <defaults>
</compile_context>

<pallas_src>
import functools

import jax
import jax.numpy as jnp
from jax.experimental import pallas as pl
from jax.experimental.pallas import tpu as pltpu

# Plain Python float -> trace-time literal (matches .data.fill_(-1e11)).
NEG_FILL = -100000000000.0


def _round_up(x, m):
    return ((x + m - 1) // m) * m


def _net_forward_kernel(x_ref,            # (TB, D_in)
                        w1_ref, b1_ref,   # (D_in, H), (1, H)
                        w2_ref, b2_ref,   # (H, H),    (1, H)
                        w3_ref, b3_ref,   # (H, D_out),(1, D_out)
                        o_ref,            # (TB, D_out)
                        *, off1, off2, compute_dtype):
    """3-layer MLP + static task-window mask.  off1/off2/compute_dtype are
    compile-time constants baked in via functools.partial."""
    # ---- MLP backbone: 3 MXU matmuls (f32 accumulation) + VPU bias/ReLU ----
    x = x_ref[...].astype(compute_dtype)
    h = jnp.dot(x, w1_ref[...].astype(compute_dtype),
                preferred_element_type=jnp.float32)
    h = jnp.maximum(h + b1_ref[...], 0.0)
    h = jnp.dot(h.astype(compute_dtype), w2_ref[...].astype(compute_dtype),
                preferred_element_type=jnp.float32)
    h = jnp.maximum(h + b2_ref[...], 0.0)
    out = jnp.dot(h.astype(compute_dtype), w3_ref[...].astype(compute_dtype),
                  preferred_element_type=jnp.float32) + b3_ref[...]

    # ---- task masking: out[:, :off1] = -1e11 ; out[:, off2:] = -1e11 ----
    # off1/off2 are compile-time constants -> mask folds to one vsel per vreg.
    col = jax.lax.broadcasted_iota(jnp.int32, out.shape, 1)
    keep = (col >= off1) & (col < off2)
    o_ref[...] = jnp.where(keep, out, NEG_FILL).astype(o_ref.dtype)


def net_forward(x, params, t, nc_per_task, n_outputs, *,
                matmul_dtype=None, block_b=None):
    """JAX/Pallas equivalent of Net.forward(x, t) for the MLP backbone.

    `t` must be a static Python/NumPy scalar (as in the PyTorch module); the
    task-window mask is specialized per task at trace time.
    """
    w1, b1, w2, b2, w3, b3 = params
    B, d_in = x.shape
    H = w1.shape[1]
    d_out = w3.shape[1]
    assert d_out == n_outputs

    off1 = int(t * nc_per_task)
    off2 = int((t + 1) * nc_per_task)

    # --- matmul operand dtype: bf16 once the MXU actually matters (v5e/v6e
    # f32 operands cost multiple MXU passes); exact f32 at small shapes.
    if matmul_dtype is None:
        matmul_dtype = jnp.bfloat16 if (H >= 256 and d_in >= 256) else jnp.float32
    matmul_dtype = jnp.dtype(matmul_dtype)

    # --- batch tiling: single multiple-of-8 tile for small B, 512-row tiles
    # (HBM-roofline sweet spot; sweep 256-1024) for large B.  Always pad B up
    # to a multiple of the tile so ragged batches never become one giant tile.
    if block_b is None:
        block_b = _round_up(B, 8) if B <= 512 else 512
    padded_B = _round_up(B, block_b)
    grid = (padded_B // block_b,)
    if padded_B != B:
        x = jnp.pad(x, ((0, padded_B - B), (0, 0)))

    # --- optional lane-dense output (only worth it once writeback is visible).
    pad_out = (d_out % 128 != 0) and (B >= 1024)
    d_out_p = _round_up(d_out, 128) if pad_out else d_out
    if pad_out:
        w3 = jnp.pad(w3, ((0, 0), (0, d_out_p - d_out)))
        b3 = jnp.pad(b3, ((0, 0), (0, d_out_p - d_out)))

    # Cast weights once in the wrapper (halves weight VMEM when bf16).
    if matmul_dtype != jnp.dtype(jnp.float32):
        w1 = w1.astype(matmul_dtype)
        w2 = w2.astype(matmul_dtype)
        w3 = w3.astype(matmul_dtype)

    # --- VMEM footprint: single-buffer resident weights when they get big, and
    # raise the scoped-VMEM limit only when the default 32 MiB would not fit.
    w_bytes = (d_in * H + H * H + H * d_out_p) * matmul_dtype.itemsize
    b_bytes = (2 * H + d_out_p) * 4
    x_bytes = block_b * d_in * x.dtype.itemsize
    o_bytes = block_b * d_out_p * 4
    single_buffer_weights = w_bytes > (4 << 20)
    w_bufs = 1 if single_buffer_weights else 2
    est_vmem = w_bufs * (w_bytes + b_bytes) + 2 * (x_bytes + o_bytes)
    vmem_limit = None
    if est_vmem > (30 << 20):
        vmem_limit = min(int(est_vmem * 1.5), 96 << 20)

    def wspec(shape):
        # Constant index_map -> weights stay VMEM-resident across batch tiles;
        # single-buffer them when large (no benefit from double buffering).
        if single_buffer_weights:
            return pl.BlockSpec(shape, lambda i: (0, 0),
                                pipeline_mode=pl.Buffered(1))
        return pl.BlockSpec(shape, lambda i: (0, 0))

    kernel = functools.partial(_net_forward_kernel, off1=off1, off2=off2,
                               compute_dtype=matmul_dtype)

    flops = 2 * padded_B * (d_in * H + H * H + H * d_out_p) \
            + padded_B * (2 * H + d_out_p)
    bytes_accessed = (padded_B * d_in * x.dtype.itemsize
                      + w_bytes + b_bytes
                      + padded_B * d_out_p * 4)
    cost = pl.CostEstimate(flops=flops, transcendentals=0,
                           bytes_accessed=bytes_accessed)

    cp_kwargs = dict(dimension_semantics=("parallel",))  # batch axis -> megacore
    if vmem_limit is not None:
        cp_kwargs["vmem_limit_bytes"] = vmem_limit

    out = pl.pallas_call(
        kernel,
        out_shape=jax.ShapeDtypeStruct((padded_B, d_out_p), jnp.float32),
        grid_spec=pl.GridSpec(
            grid=grid,
            in_specs=[
                pl.BlockSpec((block_b, d_in), lambda i: (i, 0)),   # x: batch-tiled
                wspec((d_in, H)),
                wspec((1, H)),
                wspec((H, H)),
                wspec((1, H)),
                wspec((H, d_out_p)),
                wspec((1, d_out_p)),
            ],
            out_specs=pl.BlockSpec((block_b, d_out_p), lambda i: (i, 0)),
        ),
        compiler_params=pltpu.CompilerParams(**cp_kwargs),
        cost_estimate=cost,
    )(x, w1, b1, w2, b2, w3, b3)

    if padded_B != B or d_out_p != d_out:
        out = out[:B, :d_out]
    return out


def _reference_forward(x, params, t, nc_per_task, n_outputs):
    w1, b1, w2, b2, w3, b3 = params
    h = jnp.maximum(x @ w1 + b1, 0.0)
    h = jnp.maximum(h @ w2 + b2, 0.0)
    out = h @ w3 + b3
    off1 = int(t * nc_per_task)
    off2 = int((t + 1) * nc_per_task)
    col = jnp.arange(n_outputs)[None, :]
    keep = (col >= off1) & (col < off2)
    return jnp.where(keep, out, NEG_FILL)


def init_params(key, n_inputs, n_hiddens, n_outputs):
    """Deterministic PyTorch-Linear-style init (uniform +-1/sqrt(fan_in))."""
    ks = jax.random.split(key, 6)

    def lin(kw, kb, fan_in, fan_out):
        bound = 1.0 / jnp.sqrt(jnp.float32(fan_in))
        w = jax.random.uniform(kw, (fan_in, fan_out), jnp.float32, -bound, bound)
        b = jax.random.uniform(kb, (1, fan_out), jnp.float32, -bound, bound)
        return w, b

    w1, b1 = lin(ks[0], ks[1], n_inputs, n_hiddens)
    w2, b2 = lin(ks[2], ks[3], n_hiddens, n_hiddens)
    w3, b3 = lin(ks[4], ks[5], n_hiddens, n_outputs)
    return (w1, b1, w2, b2, w3, b3)


if __name__ == "__main__":
    # Small shapes consistent with the module:
    #   args.n_hiddens = 32, args.n_layers = 2, nc_per_task = 4, n_tasks = 4
    #   -> n_outputs = 16; flat inputs of dim 32; batch = 8.
    N_INPUTS, N_HIDDENS = 32, 32
    N_TASKS, NC_PER_TASK = 4, 4
    N_OUTPUTS = N_TASKS * NC_PER_TASK
    T = 1  # current task id

    key = jax.random.PRNGKey(0)
    kx, kp = jax.random.split(key)
    params = init_params(kp, N_INPUTS, N_HIDDENS, N_OUTPUTS)

    ok = True
    # Test 1: shipped small batch (single tile path).
    x = jax.random.normal(kx, (8, N_INPUTS), dtype=jnp.float32)
    out = jax.block_until_ready(net_forward(x, params, T, NC_PER_TASK, N_OUTPUTS))
    ref = _reference_forward(x, params, T, NC_PER_TASK, N_OUTPUTS)
    ok &= out.shape == (8, N_OUTPUTS) and bool(jnp.allclose(out, ref, rtol=1e-5, atol=1e-5))

    # Test 2: ragged batch (exercises the pad-to-tile path).
    x2 = jax.random.normal(jax.random.fold_in(kx, 1), (12, N_INPUTS), dtype=jnp.float32)
    out2 = jax.block_until_ready(net_forward(x2, params, T, NC_PER_TASK, N_OUTPUTS))
    ref2 = _reference_forward(x2, params, T, NC_PER_TASK, N_OUTPUTS)
    ok &= out2.shape == (12, N_OUTPUTS) and bool(jnp.allclose(out2, ref2, rtol=1e-5, atol=1e-5))

    # Test 3: large ragged batch (multi-tile grid + lane-dense output padding).
    x3 = jax.random.normal(jax.random.fold_in(kx, 2), (1040, N_INPUTS), dtype=jnp.float32)
    out3 = jax.block_until_ready(net_forward(x3, params, T, NC_PER_TASK, N_OUTPUTS))
    ref3 = _reference_forward(x3, params, T, NC_PER_TASK, N_OUTPUTS)
    ok &= out3.shape == (1040, N_OUTPUTS) and bool(jnp.allclose(out3, ref3, rtol=1e-5, atol=1e-5))

    assert ok, "mismatch vs reference"

    # TODO(synk): observe()/grad_proj() are training-time gradient-projection
    # bookkeeping (autograd + Adam state), not part of the forward pass.
    print("KERNEL_OK")
</pallas_src>

<mosaic_0001>
module attributes {stable_mosaic.version = 11 : i64} {
  func.func @_net_forward_kernel(%arg0: i32, %arg1: memref<8x32xf32, #tpu.memory_space<vmem>>, %arg2: memref<32x32xf32, #tpu.memory_space<vmem>>, %arg3: memref<1x32xf32, #tpu.memory_space<vmem>>, %arg4: memref<32x32xf32, #tpu.memory_space<vmem>>, %arg5: memref<1x32xf32, #tpu.memory_space<vmem>>, %arg6: memref<32x16xf32, #tpu.memory_space<vmem>>, %arg7: memref<1x16xf32, #tpu.memory_space<vmem>>, %arg8: memref<8x16xf32, #tpu.memory_space<vmem>>) attributes {dimension_semantics = [#tpu.dimension_semantics<parallel>], iteration_bounds = array<i64: 1>, scalar_prefetch = 0 : i64, scratch_operands = 0 : i64, tpu.core_type = #tpu.core_type<tc>, window_params = [{transform_indices = @transform_0, window_bounds = array<i64: 8, 32>}, {pipeline_mode = #tpu.pipeline_mode<synchronous>, transform_indices = @transform_1, window_bounds = array<i64: 32, 32>}, {pipeline_mode = #tpu.pipeline_mode<synchronous>, transform_indices = @transform_2, window_bounds = array<i64: 1, 32>}, {pipeline_mode = #tpu.pipeline_mode<synchronous>, transform_indices = @transform_3, window_bounds = array<i64: 32, 32>}, {pipeline_mode = #tpu.pipeline_mode<synchronous>, transform_indices = @transform_4, window_bounds = array<i64: 1, 32>}, {pipeline_mode = #tpu.pipeline_mode<synchronous>, transform_indices = @transform_5, window_bounds = array<i64: 32, 16>}, {pipeline_mode = #tpu.pipeline_mode<synchronous>, transform_indices = @transform_6, window_bounds = array<i64: 1, 16>}, {transform_indices = @transform_7, window_bounds = array<i64: 8, 16>}]} {
    %c0 = arith.constant 0 : index
    %c0_0 = arith.constant 0 : index
    %0 = vector.load %arg1[%c0, %c0_0] : memref<8x32xf32, #tpu.memory_space<vmem>>, vector<8x32xf32>
    %c0_1 = arith.constant 0 : index
    %c0_2 = arith.constant 0 : index
    %1 = vector.load %arg2[%c0_1, %c0_2] : memref<32x32xf32, #tpu.memory_space<vmem>>, vector<32x32xf32>
    %cst = arith.constant dense<0.000000e+00> : vector<8x32xf32>
    %2 = tpu.matmul %0, %1, %cst {dimension_numbers = #tpu.dot_dimension_numbers<[1], [0], [0], [1], [0, 0, 1, 1], [], []>} : vector<8x32xf32>, vector<32x32xf32>, vector<8x32xf32> -> vector<8x32xf32>
    %c0_3 = arith.constant 0 : index
    %c0_4 = arith.constant 0 : index
    %3 = vector.load %arg3[%c0_3, %c0_4] : memref<1x32xf32, #tpu.memory_space<vmem>>, vector<1x32xf32>
    %4 = vector.broadcast %3 : vector<1x32xf32> to vector<8x32xf32>
    %5 = arith.addf %2, %4 : vector<8x32xf32>
    %cst_5 = arith.constant 0.000000e+00 : f32
    %6 = vector.broadcast %cst_5 : f32 to vector<8x32xf32>
    %7 = arith.maximumf %5, %6 : vector<8x32xf32>
    %c0_6 = arith.constant 0 : index
    %c0_7 = arith.constant 0 : index
    %8 = vector.load %arg4[%c0_6, %c0_7] : memref<32x32xf32, #tpu.memory_space<vmem>>, vector<32x32xf32>
    %cst_8 = arith.constant dense<0.000000e+00> : vector<8x32xf32>
    %9 = tpu.matmul %7, %8, %cst_8 {dimension_numbers = #tpu.dot_dimension_numbers<[1], [0], [0], [1], [0, 0, 1, 1], [], []>} : vector<8x32xf32>, vector<32x32xf32>, vector<8x32xf32> -> vector<8x32xf32>
    %c0_9 = arith.constant 0 : index
    %c0_10 = arith.constant 0 : index
    %10 = vector.load %arg5[%c0_9, %c0_10] : memref<1x32xf32, #tpu.memory_space<vmem>>, vector<1x32xf32>
    %11 = vector.broadcast %10 : vector<1x32xf32> to vector<8x32xf32>
    %12 = arith.addf %9, %11 : vector<8x32xf32>
    %cst_11 = arith.constant 0.000000e+00 : f32
    %13 = vector.broadcast %cst_11 : f32 to vector<8x32xf32>
    %14 = arith.maximumf %12, %13 : vector<8x32xf32>
    %c0_12 = arith.constant 0 : index
    %c0_13 = arith.constant 0 : index
    %15 = vector.load %arg6[%c0_12, %c0_13] : memref<32x16xf32, #tpu.memory_space<vmem>>, vector<32x16xf32>
    %cst_14 = arith.constant dense<0.000000e+00> : vector<8x16xf32>
    %16 = tpu.matmul %14, %15, %cst_14 {dimension_numbers = #tpu.dot_dimension_numbers<[1], [0], [0], [1], [0, 0, 1, 1], [], []>} : vector<8x32xf32>, vector<32x16xf32>, vector<8x16xf32> -> vector<8x16xf32>
    %c0_15 = arith.constant 0 : index
    %c0_16 = arith.constant 0 : index
    %17 = vector.load %arg7[%c0_15, %c0_16] : memref<1x16xf32, #tpu.memory_space<vmem>>, vector<1x16xf32>
    %18 = vector.broadcast %17 : vector<1x16xf32> to vector<8x16xf32>
    %19 = arith.addf %16, %18 : vector<8x16xf32>
    %20 = tpu.iota {dimensions = array<i32: 1>} : vector<8x16xi32>
    %c4_i32 = arith.constant 4 : i32
    %21 = vector.broadcast %c4_i32 : i32 to vector<8x16xi32>
    %22 = arith.cmpi sge, %20, %21 : vector<8x16xi32>
    %c8_i32 = arith.constant 8 : i32
    %23 = vector.broadcast %c8_i32 : i32 to vector<8x16xi32>
    %24 = arith.cmpi slt, %20, %23 : vector<8x16xi32>
    %25 = arith.andi %22, %24 : vector<8x16xi1>
    %cst_17 = arith.constant -9.99999979E+10 : f32
    %26 = vector.broadcast %cst_17 : f32 to vector<8x16xf32>
    %27 = arith.select %25, %19, %26 : vector<8x16xi1>, vector<8x16xf32>
    %c0_18 = arith.constant 0 : index
    %c0_19 = arith.constant 0 : index
    %28 = vector.load %arg8[%c0_18, %c0_19] : memref<8x16xf32, #tpu.memory_space<vmem>>, vector<8x16xf32>
    tpu.vector_store %arg8[%c0_18, %c0_19], %27 {strides = array<i32>} : memref<8x16xf32, #tpu.memory_space<vmem>>, vector<8x16xf32>,
    return
  }
  func.func @transform_0(%arg0: i32) -> (i32, i32) {
    %c0_i32 = arith.constant 0 : i32
    %c0_i32_0 = arith.constant 0 : i32
    return %arg0, %c0_i32 : i32, i32
  }
  func.func @transform_1(%arg0: i32) -> (i32, i32) {
    %c0_i32 = arith.constant 0 : i32
    %c0_i32_0 = arith.constant 0 : i32
    %c0_i32_1 = arith.constant 0 : i32
    return %c0_i32, %c0_i32_0 : i32, i32
  }
  func.func @transform_2(%arg0: i32) -> (i32, i32) {
    %c0_i32 = arith.constant 0 : i32
    %c0_i32_0 = arith.constant 0 : i32
    %c0_i32_1 = arith.constant 0 : i32
    return %c0_i32, %c0_i32_0 : i32, i32
  }
  func.func @transform_3(%arg0: i32) -> (i32, i32) {
    %c0_i32 = arith.constant 0 : i32
    %c0_i32_0 = arith.constant 0 : i32
    %c0_i32_1 = arith.constant 0 : i32
    return %c0_i32, %c0_i32_0 : i32, i32
  }
  func.func @transform_4(%arg0: i32) -> (i32, i32) {
    %c0_i32 = arith.constant 0 : i32
    %c0_i32_0 = arith.constant 0 : i32
    %c0_i32_1 = arith.constant 0 : i32
    return %c0_i32, %c0_i32_0 : i32, i32
  }
  func.func @transform_5(%arg0: i32) -> (i32, i32) {
    %c0_i32 = arith.constant 0 : i32
    %c0_i32_0 = arith.constant 0 : i32
    %c0_i32_1 = arith.constant 0 : i32
    return %c0_i32, %c0_i32_0 : i32, i32
  }
  func.func @transform_6(%arg0: i32) -> (i32, i32) {
    %c0_i32 = arith.constant 0 : i32
    %c0_i32_0 = arith.constant 0 : i32
    %c0_i32_1 = arith.constant 0 : i32
    return %c0_i32, %c0_i32_0 : i32, i32
  }
  func.func @transform_7(%arg0: i32) -> (i32, i32) {
    %c0_i32 = arith.constant 0 : i32
    %c0_i32_0 = arith.constant 0 : i32
    return %arg0, %c0_i32 : i32, i32
  }
}

</mosaic_0001>

<bundles_post_ra>
// kernel: tpu_custom_call.1
= control target key start
LH: loop header
LB: loop body
LE: loop exit
PB: predicated region body
PF: predicated region fallthrough
CT: control target
= control target key end

     0   :  { %12 = vsyncpa [#allocation3], 0  ;;  %s518_s0 = inlined_call_operand.vmem [shape: f32[8,32], index: 0, kind: input, shape index: {}]   ;;  %s519_s1 = inlined_call_operand.vmem [shape: f32[32,32], index: 1, kind: input, shape index: {}]   ;;  %s520_s2 = inlined_call_operand.vmem [shape: f32[1,32], index: 2, kind: input, shape index: {}]   ;;  %s521_s3 = inlined_call_operand.hbm [shape: f32[32,32], index: 3, kind: input, shape index: {}]   ;;  %s522_s4 = inlined_call_operand.vmem [shape: f32[1,32], index: 4, kind: input, shape index: {}]   ;;  %s523_s5 = inlined_call_operand.vmem [shape: f32[32,16], index: 5, kind: input, shape index: {}]   ;;  %s524_s6 = inlined_call_operand.vmem [shape: f32[1,16], index: 6, kind: input, shape index: {}]   ;;  %s525_s7 = inlined_call_operand.hbm [shape: f32[8,16], index: 7, kind: output, shape index: {}]  }
   0x1   :  { %13 = vsyncpa [#allocation4], 0  ;;  %s424_s24 = smov [#allocation2]  }
   0x2   :  { %s25_s25 = sshll.u32 %s424_s24, 4  ;;  %s26_s25 = int_to_ptr.vmem [resolvable:$true] %s25_s25 }
   0x3   :  { %s388_s26 = scalar_lea.vmem %s26_s25, 512  ;;  %p393_p1 = scmp.lt.s32.totalorder %s26_s25, %s26_s25 }
   0x4   :  { %p389_p0 = scmp.ne.s32.totalorder %s26_s25, %s388_s26  ;;  %p394_p2 = scmp.lt.s32.totalorder %s388_s26, %s388_s26 }
   0x6   :  { %p395_p3 = por %p394_p2, %p393_p1 }
   0x8   :  { %p396_p4 = pnand %p395_p3, %p389_p0 }
   0xa   :  { %399 = shalt.err (!%p396_p4)
}
   0xb   :  { %s425_s27 = smov 128   ;;  %s426_s28 = smov 8  }
   0xc   :  { %31 = dma.hbm_to_vmem [thread:$0]  %s521_s3, 512, %s26_s25, [#allocation3], %s425_s27, %s425_s27, %s426_s28  }
   0xd   :  { %420 = dma.done.wait [#allocation3], 512  }
   0xe   :  { %421 = vsyncadd [#allocation3], 4294966784  ;;  %v427_v0 = vmov 0.0   ;;  %vm428_vm0 = vmmov 0   ;;  %v45_v1 = vld [vmem:[%s519_s1 + $0x18] sm:$0xff]  ;;  %v44_v2 = vld [vmem:[%s519_s1 + $0x10] sm:$0xff]  ;;  %v297_v24 = vlaneseq }
   0xf   :  { %341 = vmatprep.subr.mxu0 %v427_v0  ;;  %349 = vmatprep.mubr.msk.f32.mxu0 %vm428_vm0, %v427_v0  ;;  %v131_v3 = vld [vmem:[#allocation2 + $0x18] sm:$0xff]  ;;  %v43_v4 = vld [vmem:[%s519_s1 + $0x8] sm:$0xff]  ;;  %v42_v5 = vld [vmem:[%s519_s1] sm:$0xff]  ;;  %vm53_vm1 = vcmask 261120   ;;  %vm303_vm5 = vcmask 130048  }
  0x10   :  { %352 = vmatprep.subr.mxu1 %v427_v0  ;;  %360 = vmatprep.mubr.msk.f32.mxu1 %vm428_vm0, %v427_v0  ;;  %v41_v6 = vld [vmem:[%s518_s0] sm:$0xff]  ;;  %v130_v7 = vld [vmem:[#allocation2 + $0x10] sm:$0xff]  ;;  %v129_v8 = vld [vmem:[#allocation2 + $0x8] sm:$0xff]  ;;  %v298_v25 = vand.u32 127, %v297_v24 }
  0x11   :  { %342 = vmatpush3.msra.mxu0 %v45_v1  ;;  %353 = vmatpush3.msra.mxu1 %v131_v3  ;;  %v128_v9 = vld [vmem:[#allocation2] sm:$0xff]  ;;  %v216_v10 = vld [vmem:[%s523_s5 + $0x18] sm:$0xff]  ;;  %v215_v16 = vld [vmem:[%s523_s5 + $0x10] sm:$0xff] }
  0x12   :  { %343 = vmatprep.subr.mxu0 %v427_v0  ;;  %354 = vmatprep.subr.mxu1 %v427_v0  ;;  %v320_v11 = vld [vmem:[%s520_s2] ss:$0 sm:$0xff]  ;;  %v214_v17 = vld [vmem:[%s523_s5 + $0x8] sm:$0xff]  ;;  %vm299_vm2 = vcmp.ge.s32.totalorder %v298_v25, 4  ;;  %vm300_vm3 = vcmp.lt.s32.totalorder %v298_v25, 8 }
  0x13   :  { %344 = vmatpush3.msra.mxu0 %v44_v2  ;;  %355 = vmatpush3.msra.mxu1 %v130_v7  ;;  %v213_v18 = vld [vmem:[%s523_s5] sm:$0xff]  ;;  %s429_s5 = smov [#allocation5]   ;;  %vm301_vm4 = vmand %vm299_vm2, %vm300_vm3 }
  0x14   :  { %345 = vmatprep.subr.mxu0 %v427_v0  ;;  %356 = vmatprep.subr.mxu1 %v427_v0  ;;  %v322_v19 = vld [vmem:[%s522_s4] ss:$0 sm:$0xff]  ;;  %s311_s28 = sshll.u32 %s429_s5, 4  ;;  %s312_s28 = int_to_ptr.vmem [resolvable:$true] %s311_s28 }
  0x15   :  { %346 = vmatpush3.msra.mxu0 %v43_v4  ;;  %357 = vmatpush3.msra.mxu1 %v129_v8  ;;  %v324_v26 = vld [vmem:[%s524_s6] ss:$0 sm:$0xff]  ;;  %s400_s4 = scalar_lea.vmem %s312_s28, 128  ;;  %p405_p6 = scmp.lt.s32.totalorder %s312_s28, %s312_s28 }
  0x16   :  { %347 = vmatprep.subr.mxu0 %v427_v0  ;;  %358 = vmatprep.subr.mxu1 %v427_v0  ;;  %p401_p5 = scmp.ne.s32.totalorder %s312_s28, %s400_s4  ;;  %p406_p7 = scmp.lt.s32.totalorder %s400_s4, %s400_s4 }
  0x17   :  { %348 = vmatpush3.msra.mxu0 %v42_v5  ;;  %359 = vmatpush3.msra.mxu1 %v128_v9 }
  0x18   :  { %350 = vmatmul.mubr.msk.f32.vlgmr.msra.gmra.mxu0 %vm53_vm1, %v41_v6  ;;  %363 = vmatprep.subr.mxu0 %v427_v0  ;;  %p407_p8 = por %p406_p7, %p405_p6 }
  0x19   :  { %371 = vmatprep.mubr.msk.f32.mxu0 %vm428_vm0, %v427_v0  ;;  %364 = vmatpush3.msra.mxu0 %v216_v10 }
  0x1a   :  { %365 = vmatprep.subr.mxu0 %v427_v0  ;;  %p408_p9 = pnand %p407_p8, %p401_p5 }
  0x1b   :  { %366 = vmatpush3.msra.mxu0 %v215_v16 }
  0x1c   :  { %367 = vmatprep.subr.mxu0 %v427_v0 }
  0x1d   :  { %368 = vmatpush3.msra.mxu0 %v214_v17 }
  0x1e   :  { %369 = vmatprep.subr.mxu0 %v427_v0 }
  0x1f   :  { %370 = vmatpush3.msra.mxu0 %v213_v18 }
  0xd8   :  { %v123_v12 = vpop.f32.mrf.mxu0 }
  0xd9   :  { %v124_v13 = vadd.f32 %v320_v11, %v123_v12 }
  0xda   :  { %v351_v14 = vpop.f32.mrf.mxu0 }
  0xdb   :  { %v127_v15 = vmax.f32 %v124_v13, 0.0 }
  0xdd   :  { %361 = vmatmul.mubr.msk.f32.vlgmr.msra.gmra.mxu1 %vm53_vm1, %v127_v15 }
 0x19d   :  { %v208_v20 = vpop.f32.mrf.mxu1 }
 0x19e   :  { %v209_v21 = vadd.f32 %v322_v19, %v208_v20 }
 0x19f   :  { %v362_v22 = vpop.f32.mrf.mxu1 }
 0x1a0   :  { %v212_v23 = vmax.f32 %v209_v21, 0.0 }
 0x1a2   :  { %372 = vmatmul.mubr.msk.f32.vlgmr.msra.gmra.mxu0 %vm53_vm1, %v212_v23 }
 0x262   :  { %v293_v27 = vpop.f32.mrf.mxu0 }
 0x263   :  { %v294_v28 = vadd.f32 %v324_v26, %v293_v27 }
 0x264   :  { %v373_v29 = vpop.f32.mrf.mxu0 }
 0x265   :  { %v302_v30 = vsel %vm301_vm4, %v294_v28, -1e+11 }
 0x266   :  { %304 = vst.msk [vmem:[#allocation5] sm:$0xff] %vm303_vm5, %v302_v30 }
 0x267   :  { %411 = shalt.err (!%p408_p9)
}
 0x268   :  { %314 = dma.vmem_to_hbm [thread:$0]  %s312_s28, 128, %s525_s7, [#allocation4]  }
 0x269   :  { %422 = dma.done.wait [#allocation4], 128  }
 0x26a   :  { %423 = vsyncadd [#allocation4], 4294967168 }
 0x26b   :  { %318 = vsyncpa [#allocation3], 1 }
 0x26c   :  { %319 = vsyncpa [#allocation4], 1 }

</bundles_post_ra>
